<compile_context>
chip_gen: v6e
topology: v6e:2x2x1
jax: 0.10.0
libtpu: 0.0.40
codegen_flags: <defaults>
</compile_context>

<pallas_src>
import jax
import jax.numpy as jnp
from jax.experimental import pallas as pl
from jax.experimental.pallas import tpu as pltpu

_LANE = 128


def _make_sender_kernel(activation: str):
    """Builds the kernel body for a fixed (static) activation choice."""

    def kernel(x_ref, w_ref, b_ref, o_ref):
        # x_ref: (TB, F)  w_ref: (F, TH)  b_ref: (1, TH)  o_ref: (TB, TH)
        # MXU matmul with f32 accumulation; operands stay in their native dtype.
        h = jnp.dot(x_ref[...], w_ref[...], preferred_element_type=jnp.float32)
        h = h + b_ref[...]  # bias already f32; broadcast (1, TH) over rows

        if activation == "tanh":
            y = jnp.tanh(h)                       # EUP transcendental
        elif activation == "relu":
            y = jnp.maximum(h, 0.0)               # VPU
        elif activation == "leaky":
            y = jnp.where(h >= 0.0, h, 0.01 * h)  # PyTorch LeakyReLU default slope
        else:
            raise ValueError("activation must be one of: tanh | relu | leaky")

        o_ref[...] = y.astype(o_ref.dtype)

    return kernel


def _vmem_cap_bytes():
    """75% of physical VMEM (leaves headroom for compiler scratch/semaphores)."""
    try:
        return int(pltpu.get_tpu_info().vmem_capacity_bytes * 0.75)
    except Exception:
        return 48 << 20  # safe on v5e/v6e (128 MiB) and v7x (64 MiB)


def sender_forward(x, weight, bias, *, activation="tanh", tb=None, th=None):
    """Sender forward pass.

    x:      [B, n_features]
    weight: [n_features, n_hidden]   (transpose of PyTorch nn.Linear.weight)
    bias:   [n_hidden]
    Returns [B, n_hidden] = activation(x @ weight + bias).
    """
    if activation not in ("tanh", "relu", "leaky"):
        raise ValueError("activation must be one of: tanh | relu | leaky")

    B, F = x.shape
    F2, H = weight.shape
    assert F == F2 and bias.shape == (H,)

    xsize = jnp.dtype(x.dtype).itemsize
    wsize = jnp.dtype(weight.dtype).itemsize
    osize = xsize

    # Batch tile: large enough to amortize the ~0.35us per-grid-step overhead.
    # Multiples of 256 fill the v6e/v7x MXU sublane side; 512/1024 also works
    # for v5e's 4x 128x128 MXUs.
    if tb is None:
        tb = 1024 if xsize <= 2 else 512

    # Lane-dense output: pad the hidden axis up to a multiple of 128 so stores
    # are unmasked full-lane vst.  Padding weight/bias is a one-time tiny op.
    Hp = max(_LANE, pl.cdiv(H, _LANE) * _LANE)
    if Hp != H:
        weight = jnp.pad(weight, ((0, 0), (0, Hp - H)))
        bias = jnp.pad(bias, (0, Hp - H))
    bias2d = bias.astype(jnp.float32).reshape(1, Hp)

    # Batch tiling.  No wrapper-side pad of x: Pallas handles the ragged last
    # block; garbage pad rows only produce output rows >= B, which are never
    # written back (out_shape has exactly B rows).
    tb_eff = B if B <= tb else tb  # tb is a multiple of 8; B==full-dim is legal
    nb = pl.cdiv(B, tb_eff)

    # Hidden-axis tiling: keep the weight fully resident (constant index_map)
    # unless the double-buffered weight would exceed ~16 MiB (chosen so it is
    # safe even on v7x's 64 MiB VMEM); then tile H into ~8 MiB chunks.
    if th is None:
        if 2 * F * Hp * wsize > (16 << 20):
            th = max(_LANE, ((8 << 20) // (F * wsize)) // _LANE * _LANE)
            th = min(th, Hp)
        else:
            th = Hp
    nh = pl.cdiv(Hp, th)

    # Raise the scoped VMEM limit only if the (double-buffered) working set
    # needs it; cap well below physical VMEM.
    est = 2 * (tb_eff * F * xsize + tb_eff * th * osize + F * th * wsize + th * 4)
    vmem_limit = None
    if est > (16 << 20):
        vmem_limit = min(int(est * 1.25) + (1 << 20), _vmem_cap_bytes())

    cost = pl.CostEstimate(
        flops=2 * B * F * H,
        transcendentals=B * H if activation == "tanh" else 0,
        bytes_accessed=B * F * xsize + F * Hp * wsize + Hp * 4 + B * Hp * osize,
    )

    kernel = _make_sender_kernel(activation)

    out = pl.pallas_call(
        kernel,
        out_shape=jax.ShapeDtypeStruct((B, Hp), x.dtype),
        grid_spec=pltpu.PrefetchScalarGridSpec(
            num_scalar_prefetch=0,
            # H tiles outer, batch inner: each weight tile is DMA'd once and
            # stays resident across the whole batch sweep (block index only
            # changes when j changes).
            grid=(nh, nb),
            in_specs=[
                pl.BlockSpec((tb_eff, F), lambda j, i: (i, 0)),  # x tile (streams over batch)
                pl.BlockSpec((F, th), lambda j, i: (0, j)),      # weight tile (resident per j)
                pl.BlockSpec((1, th), lambda j, i: (0, j)),      # bias tile (f32)
            ],
            out_specs=pl.BlockSpec((tb_eff, th), lambda j, i: (i, j)),  # lane-dense
        ),
        compiler_params=pltpu.CompilerParams(
            dimension_semantics=("parallel", "parallel"),
            vmem_limit_bytes=vmem_limit,
        ),
        cost_estimate=cost,
    )(x, weight, bias2d)

    return out if Hp == H else out[:, :H]


def _reference(x, weight, bias, activation="tanh"):
    h = x @ weight + bias
    if activation == "tanh":
        return jnp.tanh(h)
    if activation == "relu":
        return jnp.maximum(h, 0.0)
    if activation == "leaky":
        return jnp.where(h >= 0.0, h, 0.01 * h)
    raise ValueError(activation)


if __name__ == "__main__":
    key = jax.random.PRNGKey(0)
    kx, kw, kb, kx2, kw3, kb3, kx3 = jax.random.split(key, 7)

    # Case 1: module-native small shapes (B=8, n_features=16, n_hidden=32),
    # whole-batch single grid step, default tanh activation.
    B, n_features, n_hidden = 8, 16, 32
    bound = 1.0 / (n_features ** 0.5)  # nn.Linear default init range
    weight = jax.random.uniform(kw, (n_features, n_hidden), jnp.float32,
                                minval=-bound, maxval=bound)
    bias = jax.random.uniform(kb, (n_hidden,), jnp.float32,
                              minval=-bound, maxval=bound)
    x = jax.random.normal(kx, (B, n_features), jnp.float32)

    y = sender_forward(x, weight, bias, activation="tanh")
    jax.block_until_ready(y)
    assert y.shape == (B, n_hidden)
    assert jnp.allclose(y, _reference(x, weight, bias, "tanh"), atol=1e-5, rtol=1e-5)

    # Case 2: multi-step batch grid with a ragged last tile (no wrapper pad of x).
    B2 = 1300
    x2 = jax.random.normal(kx2, (B2, n_features), jnp.float32)
    y2 = sender_forward(x2, weight, bias, activation="relu", tb=512)
    jax.block_until_ready(y2)
    assert y2.shape == (B2, n_hidden)
    assert jnp.allclose(y2, _reference(x2, weight, bias, "relu"), atol=1e-5, rtol=1e-5)

    # Case 3: exercise the H-tiled weight path (2-D grid) + leaky activation.
    F3, H3 = 16, 384
    weight3 = jax.random.uniform(kw3, (F3, H3), jnp.float32, minval=-bound, maxval=bound)
    bias3 = jax.random.uniform(kb3, (H3,), jnp.float32, minval=-bound, maxval=bound)
    x3 = jax.random.normal(kx3, (260, F3), jnp.float32)
    y3 = sender_forward(x3, weight3, bias3, activation="leaky", tb=128, th=128)
    jax.block_until_ready(y3)
    assert y3.shape == (260, H3)
    assert jnp.allclose(y3, _reference(x3, weight3, bias3, "leaky"), atol=1e-5, rtol=1e-5)

    print("KERNEL_OK")
</pallas_src>

<mosaic_0001>
module attributes {stable_mosaic.version = 11 : i64} {
  func.func @kernel(%arg0: i32, %arg1: i32, %arg2: memref<8x16xf32, #tpu.memory_space<vmem>>, %arg3: memref<16x128xf32, #tpu.memory_space<vmem>>, %arg4: memref<1x128xf32, #tpu.memory_space<vmem>>, %arg5: memref<8x128xf32, #tpu.memory_space<vmem>>) attributes {dimension_semantics = [#tpu.dimension_semantics<parallel>, #tpu.dimension_semantics<parallel>], iteration_bounds = array<i64: 1, 1>, scalar_prefetch = 0 : i64, scratch_operands = 0 : i64, tpu.core_type = #tpu.core_type<tc>, window_params = [{transform_indices = @transform_0, window_bounds = array<i64: 8, 16>}, {transform_indices = @transform_1, window_bounds = array<i64: 16, 128>}, {transform_indices = @transform_2, window_bounds = array<i64: 1, 128>}, {transform_indices = @transform_3, window_bounds = array<i64: 8, 128>}]} {
    %c0 = arith.constant 0 : index
    %c0_0 = arith.constant 0 : index
    %0 = vector.load %arg2[%c0, %c0_0] : memref<8x16xf32, #tpu.memory_space<vmem>>, vector<8x16xf32>
    %c0_1 = arith.constant 0 : index
    %c0_2 = arith.constant 0 : index
    %1 = vector.load %arg3[%c0_1, %c0_2] : memref<16x128xf32, #tpu.memory_space<vmem>>, vector<16x128xf32>
    %cst = arith.constant dense<0.000000e+00> : vector<8x128xf32>
    %2 = tpu.matmul %0, %1, %cst {dimension_numbers = #tpu.dot_dimension_numbers<[1], [0], [0], [1], [0, 0, 1, 1], [], []>} : vector<8x16xf32>, vector<16x128xf32>, vector<8x128xf32> -> vector<8x128xf32>
    %c0_3 = arith.constant 0 : index
    %c0_4 = arith.constant 0 : index
    %3 = vector.load %arg4[%c0_3, %c0_4] : memref<1x128xf32, #tpu.memory_space<vmem>>, vector<1x128xf32>
    %4 = vector.broadcast %3 : vector<1x128xf32> to vector<8x128xf32>
    %5 = arith.addf %2, %4 : vector<8x128xf32>
    %6 = math.tanh %5 : vector<8x128xf32>
    %c0_5 = arith.constant 0 : index
    %c0_6 = arith.constant 0 : index
    %7 = vector.load %arg5[%c0_5, %c0_6] : memref<8x128xf32, #tpu.memory_space<vmem>>, vector<8x128xf32>
    tpu.vector_store %arg5[%c0_5, %c0_6], %6 {strides = array<i32>} : memref<8x128xf32, #tpu.memory_space<vmem>>, vector<8x128xf32>,
    return
  }
  func.func @transform_0(%arg0: i32, %arg1: i32) -> (i32, i32) {
    %c0_i32 = arith.constant 0 : i32
    %c0_i32_0 = arith.constant 0 : i32
    return %arg1, %c0_i32 : i32, i32
  }
  func.func @transform_1(%arg0: i32, %arg1: i32) -> (i32, i32) {
    %c0_i32 = arith.constant 0 : i32
    %c0_i32_0 = arith.constant 0 : i32
    return %c0_i32, %arg0 : i32, i32
  }
  func.func @transform_2(%arg0: i32, %arg1: i32) -> (i32, i32) {
    %c0_i32 = arith.constant 0 : i32
    %c0_i32_0 = arith.constant 0 : i32
    return %c0_i32, %arg0 : i32, i32
  }
  func.func @transform_3(%arg0: i32, %arg1: i32) -> (i32, i32) {
    %c0_i32 = arith.constant 0 : i32
    return %arg1, %arg0 : i32, i32
  }
}

</mosaic_0001>

<bundles_post_ra>
// kernel: tpu_custom_call.1
= control target key start
LH: loop header
LB: loop body
LE: loop exit
PB: predicated region body
PF: predicated region fallthrough
CT: control target
= control target key end

     0   :  { %8 = vsyncpa [#allocation3], 0  ;;  %s269_s0 = inlined_call_operand.hbm [shape: f32[8,16], index: 0, kind: input, shape index: {}]   ;;  %s270_s1 = inlined_call_operand.hbm [shape: f32[16,128], index: 1, kind: input, shape index: {}]   ;;  %s271_s2 = inlined_call_operand.vmem [shape: f32[1,128], index: 2, kind: input, shape index: {}]   ;;  %s272_s3 = inlined_call_operand.hbm [shape: f32[8,128], index: 3, kind: output, shape index: {}]  }
   0x1   :  { %9 = vsyncpa [#allocation6], 0 }
   0x2   :  { %10 = vsyncpa [#allocation4], 0  ;;  %s230_s12 = smov [#allocation2]   ;;  %s231_s14 = smov [#allocation5]  }
   0x3   :  { %s17_s13 = sshll.u32 %s230_s12, 4  ;;  %s26_s15 = sshll.u32 %s231_s14, 4  ;;  %s18_s13 = int_to_ptr.vmem [resolvable:$true] %s17_s13  ;;  %s27_s15 = int_to_ptr.vmem [resolvable:$true] %s26_s15 }
   0x4   :  { %s172_s16 = scalar_lea.vmem %s18_s13, 128  ;;  %p177_p1 = scmp.lt.s32.totalorder %s18_s13, %s18_s13 }
   0x5   :  { %p173_p0 = scmp.ne.s32.totalorder %s18_s13, %s172_s16  ;;  %p178_p2 = scmp.lt.s32.totalorder %s172_s16, %s172_s16 }
   0x7   :  { %p179_p3 = por %p178_p2, %p177_p1 }
   0x9   :  { %p180_p4 = pnand %p179_p3, %p173_p0 }
   0xb   :  { %183 = shalt.err (!%p180_p4)
}
   0xc   :  { %20 = dma.hbm_to_vmem [thread:$0]  %s269_s0, 128, %s18_s13, [#allocation3]  }
   0xd   :  { %s192_s19 = scalar_lea.vmem %s27_s15, 256  ;;  %p197_p6 = scmp.lt.s32.totalorder %s27_s15, %s27_s15 }
   0xe   :  { %p193_p5 = scmp.ne.s32.totalorder %s27_s15, %s192_s19  ;;  %p198_p7 = scmp.lt.s32.totalorder %s192_s19, %s192_s19 }
  0x10   :  { %p199_p8 = por %p198_p7, %p197_p6 }
  0x12   :  { %p200_p9 = pnand %p199_p8, %p193_p5 }
  0x14   :  { %203 = shalt.err (!%p200_p9)
}
  0x15   :  { %s232_s20 = smov 128   ;;  %s233_s21 = smov 8  }
  0x16   :  { %32 = dma.hbm_to_vmem [thread:$0]  %s270_s1, 256, %s27_s15, [#allocation6], %s232_s20, %s232_s20, %s233_s21  }
  0x17   :  { %224 = dma.done.wait [#allocation3], 128  }
  0x18   :  { %225 = vsyncadd [#allocation3], 4294967168 }
  0x19   :  { %226 = dma.done.wait [#allocation6], 256  }
  0x1a   :  { %227 = vsyncadd [#allocation6], 4294967040  ;;  %v234_v0 = vmov 0.0   ;;  %vm235_vm0 = vmmov 0   ;;  %v43_v1 = vld [vmem:[#allocation5 + $0x8] sm:$0xff]  ;;  %v42_v2 = vld [vmem:[#allocation5] sm:$0xff] }
  0x1b   :  { %148 = vmatprep.subr.mxu0 %v234_v0  ;;  %152 = vmatprep.mubr.msk.f32.mxu0 %vm235_vm0, %v234_v0  ;;  %v41_v3 = vld [vmem:[#allocation2] sm:$0xff]  ;;  %vm51_vm1 = vcmask 130048   ;;  %s236_s1 = smov [#allocation7]  }
  0x1c   :  { %149 = vmatpush3.msra.mxu0 %v43_v1  ;;  %v143_v4 = vld [vmem:[%s271_s2] ss:$0 sm:$0xff]  ;;  %s133_s25 = sshll.u32 %s236_s1, 4  ;;  %s134_s25 = int_to_ptr.vmem [resolvable:$true] %s133_s25 }
  0x1d   :  { %150 = vmatprep.subr.mxu0 %v234_v0  ;;  %s204_s26 = scalar_lea.vmem %s134_s25, 128  ;;  %p209_p11 = scmp.lt.s32.totalorder %s134_s25, %s134_s25 }
  0x1e   :  { %151 = vmatpush3.msra.mxu0 %v42_v2  ;;  %p205_p10 = scmp.ne.s32.totalorder %s134_s25, %s204_s26  ;;  %p210_p12 = scmp.lt.s32.totalorder %s204_s26, %s204_s26 }
  0x1f   :  { %153 = vmatmul.mubr.msk.f32.vlgmr.msra.gmra.mxu0 %vm51_vm1, %v41_v3 }
  0x20   :  { %p211_p13 = por %p210_p12, %p209_p11 }
  0x22   :  { %p212_p0 = pnand %p211_p13, %p205_p10 }
  0xdf   :  { %v121_v5 = vpop.f32.mrf.mxu0 }
  0xe0   :  { %v122_v6 = vadd.f32 %v143_v4, %v121_v5 }
  0xe1   :  { %v154_v7 = vpop.f32.mrf.mxu0 }
  0xe2   :  { %162 = vtanh.f32 %v122_v6 }
  0xef   :  { %v163_v8 = vpop.eup %162 }
  0xf0   :  { %126 = vst [vmem:[#allocation7] sm:$0xff] %v163_v8 }
  0xf1   :  { %215 = shalt.err (!%p212_p0)
}
  0xf2   :  { %136 = dma.vmem_to_hbm [thread:$0]  %s134_s25, 128, %s272_s3, [#allocation4]  }
  0xf3   :  { %228 = dma.done.wait [#allocation4], 128  }
  0xf4   :  { %229 = vsyncadd [#allocation4], 4294967168 }
  0xf5   :  { %140 = vsyncpa [#allocation3], 1 }
  0xf6   :  { %141 = vsyncpa [#allocation6], 1 }
  0xf7   :  { %142 = vsyncpa [#allocation4], 1 }

</bundles_post_ra>
